<compile_context>
chip_gen: v5e
topology: v5e:2x2
jax: 0.10.0
libtpu: 0.0.40
codegen_flags: <defaults>
</compile_context>

<pallas_src>
import math
import functools

import jax
import jax.numpy as jnp
from jax import lax
from jax.experimental import pallas as pl
from jax.experimental.pallas import tpu as pltpu

F_DIM = 133          # functional-group feature size (fixed by the reference module)
D_ATTN = 32          # attention head dim (fixed by the reference module)
NEG_BIG = -1000000000.0   # plain Python float: stays a trace-time literal, never a captured const


# --------------------------------------------------------------------------------------
# In-kernel building blocks (traced inside the single fused pallas_call)
# --------------------------------------------------------------------------------------
def _layer_norm(x, gamma, beta, eps):
    mean = jnp.mean(x, axis=-1, keepdims=True)
    diff = x - mean
    var = jnp.mean(diff * diff, axis=-1, keepdims=True)
    return diff * lax.rsqrt(var + eps) * gamma + beta


def _attention_layer(x, mask_zero, wqkv, bqkv, wd, bd, gamma, beta):
    """One AttentionLayer: fused-QKV proj -> masked SDPA -> dense -> residual -> LN.

    x: (N,133) f32, mask_zero: (N,N) bool (True where mask == 0),
    wqkv: (133,96) bf16, wd: (32,133) bf16, biases / LN params f32.
    MXU operands are bf16 with f32 accumulation; everything else stays f32.
    """
    x_bf = x.astype(jnp.bfloat16)

    # single fused Q|K|V projection: (N,133) @ (133,96)
    qkv = lax.dot_general(x_bf, wqkv, (((1,), (0,)), ((), ())),
                          preferred_element_type=jnp.float32) + bqkv
    q = qkv[:, 0:D_ATTN]
    k = qkv[:, D_ATTN:2 * D_ATTN]
    v = qkv[:, 2 * D_ATTN:3 * D_ATTN]

    # scores = q @ k^T / sqrt(d) — contract last dims of both operands (no transpose)
    scores = lax.dot_general(q.astype(jnp.bfloat16), k.astype(jnp.bfloat16),
                             (((1,), (1,)), ((), ())),
                             preferred_element_type=jnp.float32)
    scores = scores * (1.0 / math.sqrt(D_ATTN))            # Python-float literal scale
    scores = jnp.where(mask_zero, NEG_BIG, scores)          # masked_fill(mask == 0, -1e9)

    # numerically stable softmax; reciprocal lowered to the otherwise-idle EUP slot
    s_max = jnp.max(scores, axis=-1, keepdims=True)
    e = jnp.exp(scores - s_max)
    p = e * pl.reciprocal(jnp.sum(e, axis=-1, keepdims=True), approx=True)

    ctx = lax.dot_general(p.astype(jnp.bfloat16), v.astype(jnp.bfloat16),
                          (((1,), (0,)), ((), ())),
                          preferred_element_type=jnp.float32)                    # (N, 32)
    h = lax.dot_general(ctx.astype(jnp.bfloat16), wd, (((1,), (0,)), ((), ())),
                        preferred_element_type=jnp.float32) + bd                 # (N, 133)
    # dropout = identity (eval); residual + LayerNorm(eps=1e-6) in f32
    return _layer_norm(h + x, gamma, beta, 1e-6)


def _prompt_generator_kernel(hidden_size,
                             fg_ref, ridx_col_ref, ridx_row_ref, cls_ref,
                             wqkv1_ref, bqkv1_ref, wd1_ref, bd1_ref, g1_ref, b1_ref,
                             wqkv2_ref, bqkv2_ref, wd2_ref, bd2_ref, g2_ref, b2_ref,
                             lw_ref, lb_ref, ng_ref, nb_ref,
                             out_ref):
    N = fg_ref.shape[0]
    M = ridx_col_ref.shape[0]
    Hp = out_ref.shape[1]

    fg0 = fg_ref[...]                                    # (N, 133) f32
    cls = cls_ref[...]                                   # (1, 133) f32

    # ---- scatter_: fg[row_idx[m], :] = cls (row-flag select, fully vectorized) ----
    rows_nm = lax.broadcasted_iota(jnp.int32, (N, M), 0)
    is_cls = jnp.max((rows_nm == ridx_row_ref[...]).astype(jnp.float32),
                     axis=1, keepdims=True)              # (N, 1), 1.0 on cls rows
    fg = jnp.where(is_cls > 0.0, cls, fg0)               # (N, 133)

    # ---- padding mask: computed ONCE, shared by both layers (kept in f32) ----------
    pm = (fg != 0.0).astype(jnp.float32)                 # (N, 133)
    mask = lax.dot_general(pm, pm, (((1,), (1,)), ((), ())),
                           preferred_element_type=jnp.float32)   # (N, N)
    mask_zero = mask == 0.0

    # ---- two attention layers -------------------------------------------------------
    h1 = _attention_layer(fg, mask_zero, wqkv1_ref[...], bqkv1_ref[...],
                          wd1_ref[...], bd1_ref[...], g1_ref[...], b1_ref[...])
    h2 = _attention_layer(h1, mask_zero, wqkv2_ref[...], bqkv2_ref[...],
                          wd2_ref[...], bd2_ref[...], g2_ref[...], b2_ref[...])

    # ---- gather(h2, 0, fg_indexs) as a one-hot matmul (exact: 0/1 weights, f32) -----
    cols_mn = lax.broadcasted_iota(jnp.int32, (M, N), 1)
    onehot = (cols_mn == ridx_col_ref[...]).astype(jnp.float32)          # (M, N)
    cls_h = lax.dot_general(onehot, h2, (((1,), (0,)), ((), ())),
                            preferred_element_type=jnp.float32)          # (M, 133)

    # ---- prompt head: Linear(133 -> hidden, lane-dense padded to Hp) + LayerNorm ----
    y = lax.dot_general(cls_h.astype(jnp.bfloat16), lw_ref[...],
                        (((1,), (0,)), ((), ())),
                        preferred_element_type=jnp.float32) + lb_ref[...]   # (M, Hp)
    lane = lax.broadcasted_iota(jnp.int32, (M, Hp), 1)
    valid = lane < hidden_size                    # LN stats only over the real hidden dims
    y = jnp.where(valid, y, 0.0)
    inv_h = 1.0 / hidden_size                     # Python float (hidden_size is a Python int)
    mean = jnp.sum(y, axis=-1, keepdims=True) * inv_h
    diff = jnp.where(valid, y - mean, 0.0)
    var = jnp.sum(diff * diff, axis=-1, keepdims=True) * inv_h
    yn = diff * lax.rsqrt(var + 1e-5)             # nn.LayerNorm default eps
    out_ref[...] = yn * ng_ref[...] + nb_ref[...]


# --------------------------------------------------------------------------------------
# Wrapper: one fused pallas_call for the whole Prompt_generator forward
# --------------------------------------------------------------------------------------
def _pack_attention_params(p):
    # fuse Q|K|V weights into a single (133, 96) bf16 matrix; dense weight also bf16
    wqkv = jnp.concatenate([p["w_q"], p["w_k"], p["w_v"]], axis=1).astype(jnp.bfloat16)
    bqkv = jnp.concatenate([p["b_q"], p["b_k"], p["b_v"]], axis=1)
    return (wqkv, bqkv, p["w_d"].astype(jnp.bfloat16), p["b_d"], p["ln_g"], p["ln_b"])


def prompt_generator_forward(fg_states, fg_indexs, params, hidden_size):
    """
    fg_states : (N, 133) float32
    fg_indexs : (M, 133) int32 — per the reference usage each row is one row index
                repeated across the 133 columns (whole-row cls scatter / gather).
    Returns (M, hidden_size) float32.
    """
    N = fg_states.shape[0]
    M = fg_indexs.shape[0]
    H = int(hidden_size)
    Hp = ((H + 127) // 128) * 128                      # lane-dense output slab

    ridx = fg_indexs[:, 0].astype(jnp.int32)
    ridx_col = ridx.reshape(M, 1)                      # for gather one-hot (M, N)
    ridx_row = ridx.reshape(1, M)                      # for scatter row flag (N, M)

    a1 = _pack_attention_params(params["attn1"])
    a2 = _pack_attention_params(params["attn2"])

    # zero-padded, lane-dense prompt-head params
    lw = jnp.zeros((F_DIM, Hp), jnp.float32).at[:, :H].set(params["lin_w"]).astype(jnp.bfloat16)
    lb = jnp.zeros((1, Hp), jnp.float32).at[:, :H].set(params["lin_b"])
    ng = jnp.ones((1, Hp), jnp.float32).at[:, :H].set(params["norm_g"])
    nb = jnp.zeros((1, Hp), jnp.float32).at[:, :H].set(params["norm_b"])

    inputs = (fg_states, ridx_col, ridx_row, params["cls"],
              *a1, *a2, lw, lb, ng, nb)

    full = lambda shape: pl.BlockSpec(shape, lambda i: (0,) * len(shape))
    in_specs = [full(x.shape) for x in inputs]

    out = pl.pallas_call(
        functools.partial(_prompt_generator_kernel, H),
        out_shape=jax.ShapeDtypeStruct((M, Hp), jnp.float32),
        grid=(1,),
        in_specs=in_specs,
        out_specs=full((M, Hp)),
        compiler_params=pltpu.CompilerParams(dimension_semantics=("arbitrary",)),
    )(*inputs)
    return out[:, :H]


# --------------------------------------------------------------------------------------
# Pure-JAX reference of the PyTorch forward (for correctness checking in __main__)
# --------------------------------------------------------------------------------------
def _reference_forward(fg_states, fg_indexs, params, hidden_size):
    fg = fg_states
    for i in range(fg_indexs.shape[0]):
        fg = fg.at[fg_indexs[i, 0]].set(params["cls"][0])

    def attn_layer(x, init, p):
        q = x @ p["w_q"] + p["b_q"]
        k = x @ p["w_k"] + p["b_k"]
        v = x @ p["w_v"] + p["b_v"]
        pm = (init != 0).astype(jnp.float32)
        mask = pm @ pm.T
        s = (q @ k.T) / math.sqrt(D_ATTN)
        s = jnp.where(mask == 0, NEG_BIG, s)
        p_attn = jax.nn.softmax(s, axis=-1)
        h = (p_attn @ v) @ p["w_d"] + p["b_d"]
        h = h + x
        mean = h.mean(-1, keepdims=True)
        var = ((h - mean) ** 2).mean(-1, keepdims=True)
        return (h - mean) / jnp.sqrt(var + 1e-6) * p["ln_g"] + p["ln_b"]

    h1 = attn_layer(fg, fg, params["attn1"])
    h2 = attn_layer(h1, fg, params["attn2"])
    cls_h = h2[fg_indexs[:, 0]]
    y = cls_h @ params["lin_w"] + params["lin_b"]
    mean = y.mean(-1, keepdims=True)
    var = ((y - mean) ** 2).mean(-1, keepdims=True)
    return (y - mean) / jnp.sqrt(var + 1e-5) * params["norm_g"] + params["norm_b"]


# --------------------------------------------------------------------------------------
# PromptGeneratorOutput
# --------------------------------------------------------------------------------------
class PromptGeneratorOutput:
    def __init__(self, self_output, prompt_generator_params, hidden_size):
        self.self_out = self_output
        self.prompt_generator_params = prompt_generator_params   # held, unused in forward
        self.hidden_size = hidden_size

    def __call__(self, hidden_states):
        # Matches the PyTorch forward exactly: delegate to self_out only.
        return self.self_out(hidden_states)


# --------------------------------------------------------------------------------------
# Deterministic parameter construction
# --------------------------------------------------------------------------------------
def _linear_params(key, in_dim, out_dim):
    kw, kb = jax.random.split(key)
    bound = 1.0 / math.sqrt(in_dim)
    # stored as [in, out] (already transposed for x @ W)
    w = jax.random.uniform(kw, (in_dim, out_dim), jnp.float32, -bound, bound)
    b = jax.random.uniform(kb, (1, out_dim), jnp.float32, -bound, bound)
    return w, b


def make_attention_layer_params(key):
    ks = jax.random.split(key, 4)
    wq, bq = _linear_params(ks[0], F_DIM, D_ATTN)
    wk, bk = _linear_params(ks[1], F_DIM, D_ATTN)
    wv, bv = _linear_params(ks[2], F_DIM, D_ATTN)
    wd, bd = _linear_params(ks[3], D_ATTN, F_DIM)
    return dict(w_q=wq, b_q=bq, w_k=wk, b_k=bk, w_v=wv, b_v=bv, w_d=wd, b_d=bd,
                ln_g=jnp.ones((1, F_DIM), jnp.float32),
                ln_b=jnp.zeros((1, F_DIM), jnp.float32))


def make_prompt_generator_params(key, hidden_size):
    k_cls, k_lin, k_a1, k_a2 = jax.random.split(key, 4)
    lin_w, lin_b = _linear_params(k_lin, F_DIM, hidden_size)
    return dict(
        cls=jax.random.normal(k_cls, (1, F_DIM), jnp.float32),
        lin_w=lin_w, lin_b=lin_b,
        norm_g=jnp.ones((1, hidden_size), jnp.float32),
        norm_b=jnp.zeros((1, hidden_size), jnp.float32),
        attn1=make_attention_layer_params(k_a1),
        attn2=make_attention_layer_params(k_a2),
    )


if __name__ == "__main__":
    key = jax.random.PRNGKey(0)
    k_params, k_fg = jax.random.split(key)

    N = 8              # number of functional-group tokens
    M = 2              # number of cls rows to scatter/gather
    HIDDEN = 32        # Prompt_generator hidden_size

    params = make_prompt_generator_params(k_params, HIDDEN)

    fg_states = jax.random.normal(k_fg, (N, F_DIM), jnp.float32)
    # each row of fg_indexs is a constant row index repeated across the 133 columns
    fg_indexs = jnp.stack([jnp.full((F_DIM,), 1, jnp.int32),
                           jnp.full((F_DIM,), 5, jnp.int32)], axis=0)     # (M, 133)

    # Exercise the fused Pallas hot path: scatter -> attn1 -> attn2 -> gather -> head
    fg_out = prompt_generator_forward(fg_states, fg_indexs, params, HIDDEN)
    fg_out = jax.block_until_ready(fg_out)
    assert fg_out.shape == (M, HIDDEN)
    assert bool(jnp.all(jnp.isfinite(fg_out)))

    # Correctness check against a pure-JAX f32 reference (loose tol: kernel uses bf16 MXU)
    ref = _reference_forward(fg_states, fg_indexs, params, HIDDEN)
    max_err = float(jnp.max(jnp.abs(fg_out - ref)))
    assert max_err < 0.25, f"max abs error too large: {max_err}"

    # PromptGeneratorOutput.forward == self_out(hidden_states); self_out is external.
    pgo = PromptGeneratorOutput(self_output=lambda x: x,
                                prompt_generator_params=params,
                                hidden_size=HIDDEN)
    out = jax.block_until_ready(pgo(fg_states))
    assert out.shape == (N, F_DIM)

    print("KERNEL_OK")
</pallas_src>

<mosaic_0001>
module attributes {stable_mosaic.version = 11 : i64} {
  func.func @_prompt_generator_kernel(%arg0: i32, %arg1: memref<8x133xf32, #tpu.memory_space<vmem>>, %arg2: memref<2x1xi32, #tpu.memory_space<vmem>>, %arg3: memref<1x2xi32, #tpu.memory_space<vmem>>, %arg4: memref<1x133xf32, #tpu.memory_space<vmem>>, %arg5: memref<133x96xbf16, #tpu.memory_space<vmem>>, %arg6: memref<1x96xf32, #tpu.memory_space<vmem>>, %arg7: memref<32x133xbf16, #tpu.memory_space<vmem>>, %arg8: memref<1x133xf32, #tpu.memory_space<vmem>>, %arg9: memref<1x133xf32, #tpu.memory_space<vmem>>, %arg10: memref<1x133xf32, #tpu.memory_space<vmem>>, %arg11: memref<133x96xbf16, #tpu.memory_space<vmem>>, %arg12: memref<1x96xf32, #tpu.memory_space<vmem>>, %arg13: memref<32x133xbf16, #tpu.memory_space<vmem>>, %arg14: memref<1x133xf32, #tpu.memory_space<vmem>>, %arg15: memref<1x133xf32, #tpu.memory_space<vmem>>, %arg16: memref<1x133xf32, #tpu.memory_space<vmem>>, %arg17: memref<133x128xbf16, #tpu.memory_space<vmem>>, %arg18: memref<1x128xf32, #tpu.memory_space<vmem>>, %arg19: memref<1x128xf32, #tpu.memory_space<vmem>>, %arg20: memref<1x128xf32, #tpu.memory_space<vmem>>, %arg21: memref<2x128xf32, #tpu.memory_space<vmem>>) attributes {dimension_semantics = [#tpu.dimension_semantics<arbitrary>], iteration_bounds = array<i64: 1>, scalar_prefetch = 0 : i64, scratch_operands = 0 : i64, tpu.core_type = #tpu.core_type<tc>, window_params = [{pipeline_mode = #tpu.pipeline_mode<synchronous>, transform_indices = @transform_0, window_bounds = array<i64: 8, 133>}, {pipeline_mode = #tpu.pipeline_mode<synchronous>, transform_indices = @transform_1, window_bounds = array<i64: 2, 1>}, {pipeline_mode = #tpu.pipeline_mode<synchronous>, transform_indices = @transform_2, window_bounds = array<i64: 1, 2>}, {pipeline_mode = #tpu.pipeline_mode<synchronous>, transform_indices = @transform_3, window_bounds = array<i64: 1, 133>}, {pipeline_mode = #tpu.pipeline_mode<synchronous>, transform_indices = @transform_4, window_bounds = array<i64: 133, 96>}, {pipeline_mode = #tpu.pipeline_mode<synchronous>, transform_indices = @transform_5, window_bounds = array<i64: 1, 96>}, {pipeline_mode = #tpu.pipeline_mode<synchronous>, transform_indices = @transform_6, window_bounds = array<i64: 32, 133>}, {pipeline_mode = #tpu.pipeline_mode<synchronous>, transform_indices = @transform_7, window_bounds = array<i64: 1, 133>}, {pipeline_mode = #tpu.pipeline_mode<synchronous>, transform_indices = @transform_8, window_bounds = array<i64: 1, 133>}, {pipeline_mode = #tpu.pipeline_mode<synchronous>, transform_indices = @transform_9, window_bounds = array<i64: 1, 133>}, {pipeline_mode = #tpu.pipeline_mode<synchronous>, transform_indices = @transform_10, window_bounds = array<i64: 133, 96>}, {pipeline_mode = #tpu.pipeline_mode<synchronous>, transform_indices = @transform_11, window_bounds = array<i64: 1, 96>}, {pipeline_mode = #tpu.pipeline_mode<synchronous>, transform_indices = @transform_12, window_bounds = array<i64: 32, 133>}, {pipeline_mode = #tpu.pipeline_mode<synchronous>, transform_indices = @transform_13, window_bounds = array<i64: 1, 133>}, {pipeline_mode = #tpu.pipeline_mode<synchronous>, transform_indices = @transform_14, window_bounds = array<i64: 1, 133>}, {pipeline_mode = #tpu.pipeline_mode<synchronous>, transform_indices = @transform_15, window_bounds = array<i64: 1, 133>}, {pipeline_mode = #tpu.pipeline_mode<synchronous>, transform_indices = @transform_16, window_bounds = array<i64: 133, 128>}, {pipeline_mode = #tpu.pipeline_mode<synchronous>, transform_indices = @transform_17, window_bounds = array<i64: 1, 128>}, {pipeline_mode = #tpu.pipeline_mode<synchronous>, transform_indices = @transform_18, window_bounds = array<i64: 1, 128>}, {pipeline_mode = #tpu.pipeline_mode<synchronous>, transform_indices = @transform_19, window_bounds = array<i64: 1, 128>}, {pipeline_mode = #tpu.pipeline_mode<synchronous>, transform_indices = @transform_20, window_bounds = array<i64: 2, 128>}]} {
    %c0 = arith.constant 0 : index
    %c0_0 = arith.constant 0 : index
    %0 = vector.load %arg1[%c0, %c0_0] : memref<8x133xf32, #tpu.memory_space<vmem>>, vector<8x133xf32>
    %c0_1 = arith.constant 0 : index
    %c0_2 = arith.constant 0 : index
    %1 = vector.load %arg4[%c0_1, %c0_2] : memref<1x133xf32, #tpu.memory_space<vmem>>, vector<1x133xf32>
    %2 = tpu.iota {dimensions = array<i32: 0>} : vector<8x2xi32>
    %c0_3 = arith.constant 0 : index
    %c0_4 = arith.constant 0 : index
    %3 = vector.load %arg3[%c0_3, %c0_4] : memref<1x2xi32, #tpu.memory_space<vmem>>, vector<1x2xi32>
    %4 = vector.broadcast %3 : vector<1x2xi32> to vector<8x2xi32>
    %5 = arith.cmpi eq, %2, %4 : vector<8x2xi32>
    %6 = arith.extui %5 : vector<8x2xi1> to vector<8x2xi32>
    %7 = arith.sitofp %6 : vector<8x2xi32> to vector<8x2xf32>
    %cst = arith.constant dense<0xFF800000> : vector<8xf32>
    %8 = vector.multi_reduction <maximumf>, %7, %cst [1] : vector<8x2xf32> to vector<8xf32>
    %9 = vector.shape_cast %8 : vector<8xf32> to vector<8x1xf32>
    %cst_5 = arith.constant 0.000000e+00 : f32
    %10 = vector.broadcast %cst_5 : f32 to vector<8x1xf32>
    %11 = arith.cmpf ogt, %9, %10 : vector<8x1xf32>
    %12 = vector.shape_cast %11 : vector<8x1xi1> to vector<8x1xi1>
    %13 = vector.broadcast %12 : vector<8x1xi1> to vector<8x133xi1>
    %14 = vector.shape_cast %1 : vector<1x133xf32> to vector<1x133xf32>
    %15 = vector.broadcast %14 : vector<1x133xf32> to vector<8x133xf32>
    %16 = arith.select %13, %15, %0 : vector<8x133xi1>, vector<8x133xf32>
    %cst_6 = arith.constant 0.000000e+00 : f32
    %17 = vector.broadcast %cst_6 : f32 to vector<8x133xf32>
    %18 = arith.cmpf one, %16, %17 : vector<8x133xf32>
    %19 = arith.extui %18 : vector<8x133xi1> to vector<8x133xi32>
    %20 = arith.sitofp %19 : vector<8x133xi32> to vector<8x133xf32>
    %cst_7 = arith.constant dense<0.000000e+00> : vector<8x8xf32>
    %21 = tpu.matmul %20, %20, %cst_7 {dimension_numbers = #tpu.dot_dimension_numbers<[1], [1], [0], [0], [0, 0, 1, 0], [], []>} : vector<8x133xf32>, vector<8x133xf32>, vector<8x8xf32> -> vector<8x8xf32>
    %cst_8 = arith.constant 0.000000e+00 : f32
    %22 = vector.broadcast %cst_8 : f32 to vector<8x8xf32>
    %23 = arith.cmpf oeq, %21, %22 : vector<8x8xf32>
    %c0_9 = arith.constant 0 : index
    %c0_10 = arith.constant 0 : index
    %24 = vector.load %arg5[%c0_9, %c0_10] : memref<133x96xbf16, #tpu.memory_space<vmem>>, vector<133x96xbf16>
    %c0_11 = arith.constant 0 : index
    %c0_12 = arith.constant 0 : index
    %25 = vector.load %arg6[%c0_11, %c0_12] : memref<1x96xf32, #tpu.memory_space<vmem>>, vector<1x96xf32>
    %c0_13 = arith.constant 0 : index
    %c0_14 = arith.constant 0 : index
    %26 = vector.load %arg7[%c0_13, %c0_14] : memref<32x133xbf16, #tpu.memory_space<vmem>>, vector<32x133xbf16>
    %c0_15 = arith.constant 0 : index
    %c0_16 = arith.constant 0 : index
    %27 = vector.load %arg8[%c0_15, %c0_16] : memref<1x133xf32, #tpu.memory_space<vmem>>, vector<1x133xf32>
    %c0_17 = arith.constant 0 : index
    %c0_18 = arith.constant 0 : index
    %28 = vector.load %arg9[%c0_17, %c0_18] : memref<1x133xf32, #tpu.memory_space<vmem>>, vector<1x133xf32>
    %c0_19 = arith.constant 0 : index
    %c0_20 = arith.constant 0 : index
    %29 = vector.load %arg10[%c0_19, %c0_20] : memref<1x133xf32, #tpu.memory_space<vmem>>, vector<1x133xf32>
    %30 = arith.truncf %16 : vector<8x133xf32> to vector<8x133xbf16>
    %cst_21 = arith.constant dense<0.000000e+00> : vector<8x96xf32>
    %31 = tpu.matmul %30, %24, %cst_21 {dimension_numbers = #tpu.dot_dimension_numbers<[1], [0], [0], [1], [0, 0, 1, 1], [], []>} : vector<8x133xbf16>, vector<133x96xbf16>, vector<8x96xf32> -> vector<8x96xf32>
    %32 = vector.broadcast %25 : vector<1x96xf32> to vector<8x96xf32>
    %33 = arith.addf %31, %32 : vector<8x96xf32>
    %34 = vector.extract_strided_slice %33 {offsets = [0, 0], sizes = [8, 32], strides = [1, 1]} : vector<8x96xf32> to vector<8x32xf32>
    %35 = vector.extract_strided_slice %33 {offsets = [0, 32], sizes = [8, 32], strides = [1, 1]} : vector<8x96xf32> to vector<8x32xf32>
    %36 = vector.extract_strided_slice %33 {offsets = [0, 64], sizes = [8, 32], strides = [1, 1]} : vector<8x96xf32> to vector<8x32xf32>
    %37 = arith.truncf %34 : vector<8x32xf32> to vector<8x32xbf16>
    %38 = arith.truncf %35 : vector<8x32xf32> to vector<8x32xbf16>
    %cst_22 = arith.constant dense<0.000000e+00> : vector<8x8xf32>
    %39 = tpu.matmul %37, %38, %cst_22 {dimension_numbers = #tpu.dot_dimension_numbers<[1], [1], [0], [0], [0, 0, 1, 0], [], []>} : vector<8x32xbf16>, vector<8x32xbf16>, vector<8x8xf32> -> vector<8x8xf32>
    %cst_23 = arith.constant 0.176776692 : f32
    %40 = vector.broadcast %cst_23 : f32 to vector<8x8xf32>
    %41 = arith.mulf %39, %40 : vector<8x8xf32>
    %cst_24 = arith.constant -1.000000e+09 : f32
    %42 = vector.broadcast %cst_24 : f32 to vector<8x8xf32>
    %43 = arith.select %23, %42, %41 : vector<8x8xi1>, vector<8x8xf32>
    %cst_25 = arith.constant dense<0xFF800000> : vector<8xf32>
    %44 = vector.multi_reduction <maximumf>, %43, %cst_25 [1] : vector<8x8xf32> to vector<8xf32>
    %45 = vector.shape_cast %44 : vector<8xf32> to vector<8x1xf32>
    %46 = vector.broadcast %45 : vector<8x1xf32> to vector<8x8xf32>
    %47 = arith.subf %43, %46 : vector<8x8xf32>
    %48 = math.exp %47 : vector<8x8xf32>
    %cst_26 = arith.constant dense<0.000000e+00> : vector<8xf32>
    %49 = vector.multi_reduction <add>, %48, %cst_26 [1] : vector<8x8xf32> to vector<8xf32>
    %50 = vector.shape_cast %49 : vector<8xf32> to vector<8x1xf32>
    %51 = tpu.reciprocal %50 {approx = true} : vector<8x1xf32> -> vector<8x1xf32>
    %52 = vector.broadcast %51 : vector<8x1xf32> to vector<8x8xf32>
    %53 = arith.mulf %48, %52 : vector<8x8xf32>
    %54 = arith.truncf %53 : vector<8x8xf32> to vector<8x8xbf16>
    %55 = arith.truncf %36 : vector<8x32xf32> to vector<8x32xbf16>
    %cst_27 = arith.constant dense<0.000000e+00> : vector<8x32xf32>
    %56 = tpu.matmul %54, %55, %cst_27 {dimension_numbers = #tpu.dot_dimension_numbers<[1], [0], [0], [1], [0, 0, 1, 1], [], []>} : vector<8x8xbf16>, vector<8x32xbf16>, vector<8x32xf32> -> vector<8x32xf32>
    %57 = arith.truncf %56 : vector<8x32xf32> to vector<8x32xbf16>
    %cst_28 = arith.constant dense<0.000000e+00> : vector<8x133xf32>
    %58 = tpu.matmul %57, %26, %cst_28 {dimension_numbers = #tpu.dot_dimension_numbers<[1], [0], [0], [1], [0, 0, 1, 1], [], []>} : vector<8x32xbf16>, vector<32x133xbf16>, vector<8x133xf32> -> vector<8x133xf32>
    %59 = vector.broadcast %27 : vector<1x133xf32> to vector<8x133xf32>
    %60 = arith.addf %58, %59 : vector<8x133xf32>
    %61 = arith.addf %60, %16 : vector<8x133xf32>
    %cst_29 = arith.constant dense<0.000000e+00> : vector<8xf32>
    %62 = vector.multi_reduction <add>, %61, %cst_29 [1] : vector<8x133xf32> to vector<8xf32>
    %63 = vector.shape_cast %62 : vector<8xf32> to vector<8x1xf32>
    %cst_30 = arith.constant 1.330000e+02 : f32
    %64 = vector.broadcast %cst_30 : f32 to vector<8x1xf32>
    %65 = arith.divf %63, %64 : vector<8x1xf32>
    %66 = vector.broadcast %65 : vector<8x1xf32> to vector<8x133xf32>
    %67 = arith.subf %61, %66 : vector<8x133xf32>
    %68 = arith.mulf %67, %67 : vector<8x133xf32>
    %cst_31 = arith.constant dense<0.000000e+00> : vector<8xf32>
    %69 = vector.multi_reduction <add>, %68, %cst_31 [1] : vector<8x133xf32> to vector<8xf32>
    %70 = vector.shape_cast %69 : vector<8xf32> to vector<8x1xf32>
    %cst_32 = arith.constant 1.330000e+02 : f32
    %71 = vector.broadcast %cst_32 : f32 to vector<8x1xf32>
    %72 = arith.divf %70, %71 : vector<8x1xf32>
    %cst_33 = arith.constant 9.99999997E-7 : f32
    %73 = vector.broadcast %cst_33 : f32 to vector<8x1xf32>
    %74 = arith.addf %72, %73 : vector<8x1xf32>
    %75 = math.rsqrt %74 : vector<8x1xf32>
    %76 = vector.broadcast %75 : vector<8x1xf32> to vector<8x133xf32>
    %77 = arith.mulf %67, %76 : vector<8x133xf32>
    %78 = vector.broadcast %28 : vector<1x133xf32> to vector<8x133xf32>
    %79 = arith.mulf %77, %78 : vector<8x133xf32>
    %80 = vector.broadcast %29 : vector<1x133xf32> to vector<8x133xf32>
    %81 = arith.addf %79, %80 : vector<8x133xf32>
    %c0_34 = arith.constant 0 : index
    %c0_35 = arith.constant 0 : index
    %82 = vector.load %arg11[%c0_34, %c0_35] : memref<133x96xbf16, #tpu.memory_space<vmem>>, vector<133x96xbf16>
    %c0_36 = arith.constant 0 : index
    %c0_37 = arith.constant 0 : index
    %83 = vector.load %arg12[%c0_36, %c0_37] : memref<1x96xf32, #tpu.memory_space<vmem>>, vector<1x96xf32>
    %c0_38 = arith.constant 0 : index
    %c0_39 = arith.constant 0 : index
    %84 = vector.load %arg13[%c0_38, %c0_39] : memref<32x133xbf16, #tpu.memory_space<vmem>>, vector<32x133xbf16>
    %c0_40 = arith.constant 0 : index
    %c0_41 = arith.constant 0 : index
    %85 = vector.load %arg14[%c0_40, %c0_41] : memref<1x133xf32, #tpu.memory_space<vmem>>, vector<1x133xf32>
    %c0_42 = arith.constant 0 : index
    %c0_43 = arith.constant 0 : index
    %86 = vector.load %arg15[%c0_42, %c0_43] : memref<1x133xf32, #tpu.memory_space<vmem>>, vector<1x133xf32>
    %c0_44 = arith.constant 0 : index
    %c0_45 = arith.constant 0 : index
    %87 = vector.load %arg16[%c0_44, %c0_45] : memref<1x133xf32, #tpu.memory_space<vmem>>, vector<1x133xf32>
    %88 = arith.truncf %81 : vector<8x133xf32> to vector<8x133xbf16>
    %cst_46 = arith.constant dense<0.000000e+00> : vector<8x96xf32>
    %89 = tpu.matmul %88, %82, %cst_46 {dimension_numbers = #tpu.dot_dimension_numbers<[1], [0], [0], [1], [0, 0, 1, 1], [], []>} : vector<8x133xbf16>, vector<133x96xbf16>, vector<8x96xf32> -> vector<8x96xf32>
    %90 = vector.broadcast %83 : vector<1x96xf32> to vector<8x96xf32>
    %91 = arith.addf %89, %90 : vector<8x96xf32>
    %92 = vector.extract_strided_slice %91 {offsets = [0, 0], sizes = [8, 32], strides = [1, 1]} : vector<8x96xf32> to vector<8x32xf32>
    %93 = vector.extract_strided_slice %91 {offsets = [0, 32], sizes = [8, 32], strides = [1, 1]} : vector<8x96xf32> to vector<8x32xf32>
    %94 = vector.extract_strided_slice %91 {offsets = [0, 64], sizes = [8, 32], strides = [1, 1]} : vector<8x96xf32> to vector<8x32xf32>
    %95 = arith.truncf %92 : vector<8x32xf32> to vector<8x32xbf16>
    %96 = arith.truncf %93 : vector<8x32xf32> to vector<8x32xbf16>
    %cst_47 = arith.constant dense<0.000000e+00> : vector<8x8xf32>
    %97 = tpu.matmul %95, %96, %cst_47 {dimension_numbers = #tpu.dot_dimension_numbers<[1], [1], [0], [0], [0, 0, 1, 0], [], []>} : vector<8x32xbf16>, vector<8x32xbf16>, vector<8x8xf32> -> vector<8x8xf32>
    %cst_48 = arith.constant 0.176776692 : f32
    %98 = vector.broadcast %cst_48 : f32 to vector<8x8xf32>
    %99 = arith.mulf %97, %98 : vector<8x8xf32>
    %cst_49 = arith.constant -1.000000e+09 : f32
    %100 = vector.broadcast %cst_49 : f32 to vector<8x8xf32>
    %101 = arith.select %23, %100, %99 : vector<8x8xi1>, vector<8x8xf32>
    %cst_50 = arith.constant dense<0xFF800000> : vector<8xf32>
    %102 = vector.multi_reduction <maximumf>, %101, %cst_50 [1] : vector<8x8xf32> to vector<8xf32>
    %103 = vector.shape_cast %102 : vector<8xf32> to vector<8x1xf32>
    %104 = vector.broadcast %103 : vector<8x1xf32> to vector<8x8xf32>
    %105 = arith.subf %101, %104 : vector<8x8xf32>
    %106 = math.exp %105 : vector<8x8xf32>
    %cst_51 = arith.constant dense<0.000000e+00> : vector<8xf32>
    %107 = vector.multi_reduction <add>, %106, %cst_51 [1] : vector<8x8xf32> to vector<8xf32>
    %108 = vector.shape_cast %107 : vector<8xf32> to vector<8x1xf32>
    %109 = tpu.reciprocal %108 {approx = true} : vector<8x1xf32> -> vector<8x1xf32>
    %110 = vector.broadcast %109 : vector<8x1xf32> to vector<8x8xf32>
    %111 = arith.mulf %106, %110 : vector<8x8xf32>
    %112 = arith.truncf %111 : vector<8x8xf32> to vector<8x8xbf16>
    %113 = arith.truncf %94 : vector<8x32xf32> to vector<8x32xbf16>
    %cst_52 = arith.constant dense<0.000000e+00> : vector<8x32xf32>
    %114 = tpu.matmul %112, %113, %cst_52 {dimension_numbers = #tpu.dot_dimension_numbers<[1], [0], [0], [1], [0, 0, 1, 1], [], []>} : vector<8x8xbf16>, vector<8x32xbf16>, vector<8x32xf32> -> vector<8x32xf32>
    %115 = arith.truncf %114 : vector<8x32xf32> to vector<8x32xbf16>
    %cst_53 = arith.constant dense<0.000000e+00> : vector<8x133xf32>
    %116 = tpu.matmul %115, %84, %cst_53 {dimension_numbers = #tpu.dot_dimension_numbers<[1], [0], [0], [1], [0, 0, 1, 1], [], []>} : vector<8x32xbf16>, vector<32x133xbf16>, vector<8x133xf32> -> vector<8x133xf32>
    %117 = vector.broadcast %85 : vector<1x133xf32> to vector<8x133xf32>
    %118 = arith.addf %116, %117 : vector<8x133xf32>
    %119 = arith.addf %118, %81 : vector<8x133xf32>
    %cst_54 = arith.constant dense<0.000000e+00> : vector<8xf32>
    %120 = vector.multi_reduction <add>, %119, %cst_54 [1] : vector<8x133xf32> to vector<8xf32>
    %121 = vector.shape_cast %120 : vector<8xf32> to vector<8x1xf32>
    %cst_55 = arith.constant 1.330000e+02 : f32
    %122 = vector.broadcast %cst_55 : f32 to vector<8x1xf32>
    %123 = arith.divf %121, %122 : vector<8x1xf32>
    %124 = vector.broadcast %123 : vector<8x1xf32> to vector<8x133xf32>
    %125 = arith.subf %119, %124 : vector<8x133xf32>
    %126 = arith.mulf %125, %125 : vector<8x133xf32>
    %cst_56 = arith.constant dense<0.000000e+00> : vector<8xf32>
    %127 = vector.multi_reduction <add>, %126, %cst_56 [1] : vector<8x133xf32> to vector<8xf32>
    %128 = vector.shape_cast %127 : vector<8xf32> to vector<8x1xf32>
    %cst_57 = arith.constant 1.330000e+02 : f32
    %129 = vector.broadcast %cst_57 : f32 to vector<8x1xf32>
    %130 = arith.divf %128, %129 : vector<8x1xf32>
    %cst_58 = arith.constant 9.99999997E-7 : f32
    %131 = vector.broadcast %cst_58 : f32 to vector<8x1xf32>
    %132 = arith.addf %130, %131 : vector<8x1xf32>
    %133 = math.rsqrt %132 : vector<8x1xf32>
    %134 = vector.broadcast %133 : vector<8x1xf32> to vector<8x133xf32>
    %135 = arith.mulf %125, %134 : vector<8x133xf32>
    %136 = vector.broadcast %86 : vector<1x133xf32> to vector<8x133xf32>
    %137 = arith.mulf %135, %136 : vector<8x133xf32>
    %138 = vector.broadcast %87 : vector<1x133xf32> to vector<8x133xf32>
    %139 = arith.addf %137, %138 : vector<8x133xf32>
    %140 = tpu.iota {dimensions = array<i32: 1>} : vector<2x8xi32>
    %c0_59 = arith.constant 0 : index
    %c0_60 = arith.constant 0 : index
    %141 = vector.load %arg2[%c0_59, %c0_60] : memref<2x1xi32, #tpu.memory_space<vmem>>, vector<2x1xi32>
    %142 = vector.broadcast %141 : vector<2x1xi32> to vector<2x8xi32>
    %143 = arith.cmpi eq, %140, %142 : vector<2x8xi32>
    %144 = arith.extui %143 : vector<2x8xi1> to vector<2x8xi32>
    %145 = arith.sitofp %144 : vector<2x8xi32> to vector<2x8xf32>
    %cst_61 = arith.constant dense<0.000000e+00> : vector<2x133xf32>
    %146 = tpu.matmul %145, %139, %cst_61 {dimension_numbers = #tpu.dot_dimension_numbers<[1], [0], [0], [1], [0, 0, 1, 1], [], []>} : vector<2x8xf32>, vector<8x133xf32>, vector<2x133xf32> -> vector<2x133xf32>
    %147 = arith.truncf %146 : vector<2x133xf32> to vector<2x133xbf16>
    %c0_62 = arith.constant 0 : index
    %c0_63 = arith.constant 0 : index
    %148 = vector.load %arg17[%c0_62, %c0_63] : memref<133x128xbf16, #tpu.memory_space<vmem>>, vector<133x128xbf16>
    %cst_64 = arith.constant dense<0.000000e+00> : vector<2x128xf32>
    %149 = tpu.matmul %147, %148, %cst_64 {dimension_numbers = #tpu.dot_dimension_numbers<[1], [0], [0], [1], [0, 0, 1, 1], [], []>} : vector<2x133xbf16>, vector<133x128xbf16>, vector<2x128xf32> -> vector<2x128xf32>
    %c0_65 = arith.constant 0 : index
    %c0_66 = arith.constant 0 : index
    %150 = vector.load %arg18[%c0_65, %c0_66] : memref<1x128xf32, #tpu.memory_space<vmem>>, vector<1x128xf32>
    %151 = vector.broadcast %150 : vector<1x128xf32> to vector<2x128xf32>
    %152 = arith.addf %149, %151 : vector<2x128xf32>
    %153 = tpu.iota {dimensions = array<i32: 1>} : vector<2x128xi32>
    %c32_i32 = arith.constant 32 : i32
    %154 = vector.broadcast %c32_i32 : i32 to vector<2x128xi32>
    %155 = arith.cmpi slt, %153, %154 : vector<2x128xi32>
    %cst_67 = arith.constant 0.000000e+00 : f32
    %156 = vector.broadcast %cst_67 : f32 to vector<2x128xf32>
    %157 = arith.select %155, %152, %156 : vector<2x128xi1>, vector<2x128xf32>
    %cst_68 = arith.constant dense<0.000000e+00> : vector<2xf32>
    %158 = vector.multi_reduction <add>, %157, %cst_68 [1] : vector<2x128xf32> to vector<2xf32>
    %159 = vector.shape_cast %158 : vector<2xf32> to vector<2x1xf32>
    %cst_69 = arith.constant 3.125000e-02 : f32
    %160 = vector.broadcast %cst_69 : f32 to vector<2x1xf32>
    %161 = arith.mulf %159, %160 : vector<2x1xf32>
    %162 = vector.broadcast %161 : vector<2x1xf32> to vector<2x128xf32>
    %163 = arith.subf %157, %162 : vector<2x128xf32>
    %cst_70 = arith.constant 0.000000e+00 : f32
    %164 = vector.broadcast %cst_70 : f32 to vector<2x128xf32>
    %165 = arith.select %155, %163, %164 : vector<2x128xi1>, vector<2x128xf32>
    %166 = arith.mulf %165, %165 : vector<2x128xf32>
    %cst_71 = arith.constant dense<0.000000e+00> : vector<2xf32>
    %167 = vector.multi_reduction <add>, %166, %cst_71 [1] : vector<2x128xf32> to vector<2xf32>
    %168 = vector.shape_cast %167 : vector<2xf32> to vector<2x1xf32>
    %cst_72 = arith.constant 3.125000e-02 : f32
    %169 = vector.broadcast %cst_72 : f32 to vector<2x1xf32>
    %170 = arith.mulf %168, %169 : vector<2x1xf32>
    %cst_73 = arith.constant 9.99999974E-6 : f32
    %171 = vector.broadcast %cst_73 : f32 to vector<2x1xf32>
    %172 = arith.addf %170, %171 : vector<2x1xf32>
    %173 = math.rsqrt %172 : vector<2x1xf32>
    %174 = vector.broadcast %173 : vector<2x1xf32> to vector<2x128xf32>
    %175 = arith.mulf %165, %174 : vector<2x128xf32>
    %c0_74 = arith.constant 0 : index
    %c0_75 = arith.constant 0 : index
    %176 = vector.load %arg19[%c0_74, %c0_75] : memref<1x128xf32, #tpu.memory_space<vmem>>, vector<1x128xf32>
    %177 = vector.broadcast %176 : vector<1x128xf32> to vector<2x128xf32>
    %178 = arith.mulf %175, %177 : vector<2x128xf32>
    %c0_76 = arith.constant 0 : index
    %c0_77 = arith.constant 0 : index
    %179 = vector.load %arg20[%c0_76, %c0_77] : memref<1x128xf32, #tpu.memory_space<vmem>>, vector<1x128xf32>
    %180 = vector.broadcast %179 : vector<1x128xf32> to vector<2x128xf32>
    %181 = arith.addf %178, %180 : vector<2x128xf32>
    %c0_78 = arith.constant 0 : index
    %c0_79 = arith.constant 0 : index
    %182 = vector.load %arg21[%c0_78, %c0_79] : memref<2x128xf32, #tpu.memory_space<vmem>>, vector<2x128xf32>
    tpu.vector_store %arg21[%c0_78, %c0_79], %181 {strides = array<i32>} : memref<2x128xf32, #tpu.memory_space<vmem>>, vector<2x128xf32>,
    return
  }
  func.func @transform_0(%arg0: i32) -> (i32, i32) {
    %c0_i32 = arith.constant 0 : i32
    %c0_i32_0 = arith.constant 0 : i32
    %c0_i32_1 = arith.constant 0 : i32
    return %c0_i32, %c0_i32_0 : i32, i32
  }
  func.func @transform_1(%arg0: i32) -> (i32, i32) {
    %c0_i32 = arith.constant 0 : i32
    %c0_i32_0 = arith.constant 0 : i32
    %c0_i32_1 = arith.constant 0 : i32
    return %c0_i32, %c0_i32_0 : i32, i32
  }
  func.func @transform_2(%arg0: i32) -> (i32, i32) {
    %c0_i32 = arith.constant 0 : i32
    %c0_i32_0 = arith.constant 0 : i32
    %c0_i32_1 = arith.constant 0 : i32
    return %c0_i32, %c0_i32_0 : i32, i32
  }
  func.func @transform_3(%arg0: i32) -> (i32, i32) {
    %c0_i32 = arith.constant 0 : i32
    %c0_i32_0 = arith.constant 0 : i32
    %c0_i32_1 = arith.constant 0 : i32
    return %c0_i32, %c0_i32_0 : i32, i32
  }
  func.func @transform_4(%arg0: i32) -> (i32, i32) {
    %c0_i32 = arith.constant 0 : i32
    %c0_i32_0 = arith.constant 0 : i32
    %c0_i32_1 = arith.constant 0 : i32
    return %c0_i32, %c0_i32_0 : i32, i32
  }
  func.func @transform_5(%arg0: i32) -> (i32, i32) {
    %c0_i32 = arith.constant 0 : i32
    %c0_i32_0 = arith.constant 0 : i32
    %c0_i32_1 = arith.constant 0 : i32
    return %c0_i32, %c0_i32_0 : i32, i32
  }
  func.func @transform_6(%arg0: i32) -> (i32, i32) {
    %c0_i32 = arith.constant 0 : i32
    %c0_i32_0 = arith.constant 0 : i32
    %c0_i32_1 = arith.constant 0 : i32
    return %c0_i32, %c0_i32_0 : i32, i32
  }
  func.func @transform_7(%arg0: i32) -> (i32, i32) {
    %c0_i32 = arith.constant 0 : i32
    %c0_i32_0 = arith.constant 0 : i32
    %c0_i32_1 = arith.constant 0 : i32
    return %c0_i32, %c0_i32_0 : i32, i32
  }
  func.func @transform_8(%arg0: i32) -> (i32, i32) {
    %c0_i32 = arith.constant 0 : i32
    %c0_i32_0 = arith.constant 0 : i32
    %c0_i32_1 = arith.constant 0 : i32
    return %c0_i32, %c0_i32_0 : i32, i32
  }
  func.func @transform_9(%arg0: i32) -> (i32, i32) {
    %c0_i32 = arith.constant 0 : i32
    %c0_i32_0 = arith.constant 0 : i32
    %c0_i32_1 = arith.constant 0 : i32
    return %c0_i32, %c0_i32_0 : i32, i32
  }
  func.func @transform_10(%arg0: i32) -> (i32, i32) {
    %c0_i32 = arith.constant 0 : i32
    %c0_i32_0 = arith.constant 0 : i32
    %c0_i32_1 = arith.constant 0 : i32
    return %c0_i32, %c0_i32_0 : i32, i32
  }
  func.func @transform_11(%arg0: i32) -> (i32, i32) {
    %c0_i32 = arith.constant 0 : i32
    %c0_i32_0 = arith.constant 0 : i32
    %c0_i32_1 = arith.constant 0 : i32
    return %c0_i32, %c0_i32_0 : i32, i32
  }
  func.func @transform_12(%arg0: i32) -> (i32, i32) {
    %c0_i32 = arith.constant 0 : i32
    %c0_i32_0 = arith.constant 0 : i32
    %c0_i32_1 = arith.constant 0 : i32
    return %c0_i32, %c0_i32_0 : i32, i32
  }
  func.func @transform_13(%arg0: i32) -> (i32, i32) {
    %c0_i32 = arith.constant 0 : i32
    %c0_i32_0 = arith.constant 0 : i32
    %c0_i32_1 = arith.constant 0 : i32
    return %c0_i32, %c0_i32_0 : i32, i32
  }
  func.func @transform_14(%arg0: i32) -> (i32, i32) {
    %c0_i32 = arith.constant 0 : i32
    %c0_i32_0 = arith.constant 0 : i32
    %c0_i32_1 = arith.constant 0 : i32
    return %c0_i32, %c0_i32_0 : i32, i32
  }
  func.func @transform_15(%arg0: i32) -> (i32, i32) {
    %c0_i32 = arith.constant 0 : i32
    %c0_i32_0 = arith.constant 0 : i32
    %c0_i32_1 = arith.constant 0 : i32
    return %c0_i32, %c0_i32_0 : i32, i32
  }
  func.func @transform_16(%arg0: i32) -> (i32, i32) {
    %c0_i32 = arith.constant 0 : i32
    %c0_i32_0 = arith.constant 0 : i32
    %c0_i32_1 = arith.constant 0 : i32
    return %c0_i32, %c0_i32_0 : i32, i32
  }
  func.func @transform_17(%arg0: i32) -> (i32, i32) {
    %c0_i32 = arith.constant 0 : i32
    %c0_i32_0 = arith.constant 0 : i32
    %c0_i32_1 = arith.constant 0 : i32
    return %c0_i32, %c0_i32_0 : i32, i32
  }
  func.func @transform_18(%arg0: i32) -> (i32, i32) {
    %c0_i32 = arith.constant 0 : i32
    %c0_i32_0 = arith.constant 0 : i32
    %c0_i32_1 = arith.constant 0 : i32
    return %c0_i32, %c0_i32_0 : i32, i32
  }
  func.func @transform_19(%arg0: i32) -> (i32, i32) {
    %c0_i32 = arith.constant 0 : i32
    %c0_i32_0 = arith.constant 0 : i32
    %c0_i32_1 = arith.constant 0 : i32
    return %c0_i32, %c0_i32_0 : i32, i32
  }
  func.func @transform_20(%arg0: i32) -> (i32, i32) {
    %c0_i32 = arith.constant 0 : i32
    %c0_i32_0 = arith.constant 0 : i32
    %c0_i32_1 = arith.constant 0 : i32
    return %c0_i32, %c0_i32_0 : i32, i32
  }
}

</mosaic_0001>

<bundles_post_ra>
// kernel: tpu_custom_call.1
= control target key start
LH: loop header
LB: loop body
LE: loop exit
PB: predicated region body
PF: predicated region fallthrough
CT: control target
= control target key end

     0   :  { %s1793_s0 = inlined_call_operand.hbm [shape: f32[8,133], index: 0, kind: input, shape index: {}]   ;;  %s1794_s1 = inlined_call_operand.vmem [shape: s32[2,1], index: 1, kind: input, shape index: {}]   ;;  %s1795_s2 = inlined_call_operand.hbm [shape: s32[1,2], index: 2, kind: input, shape index: {}]   ;;  %s1796_s3 = inlined_call_operand.vmem [shape: f32[1,133], index: 3, kind: input, shape index: {}]   ;;  %s1797_s4 = inlined_call_operand.hbm [shape: bf16[133,96], index: 4, kind: input, shape index: {}]   ;;  %s1798_s5 = inlined_call_operand.hbm [shape: f32[1,96], index: 5, kind: input, shape index: {}]   ;;  %s1799_s6 = inlined_call_operand.hbm [shape: bf16[32,133], index: 6, kind: input, shape index: {}]   ;;  %s1800_s7 = inlined_call_operand.vmem [shape: f32[1,133], index: 7, kind: input, shape index: {}]   ;;  %s1801_s8 = inlined_call_operand.vmem [shape: f32[1,133], index: 8, kind: input, shape index: {}]   ;;  %s1802_s9 = inlined_call_operand.vmem [shape: f32[1,133], index: 9, kind: input, shape index: {}]   ;;  %s1803_s10 = inlined_call_operand.hbm [shape: bf16[133,96], index: 10, kind: input, shape index: {}]   ;;  %s1804_s11 = inlined_call_operand.hbm [shape: f32[1,96], index: 11, kind: input, shape index: {}]   ;;  %s1805_s12 = inlined_call_operand.hbm [shape: bf16[32,133], index: 12, kind: input, shape index: {}]   ;;  %s1806_s13 = inlined_call_operand.vmem [shape: f32[1,133], index: 13, kind: input, shape index: {}]   ;;  %s1807_s14 = inlined_call_operand.vmem [shape: f32[1,133], index: 14, kind: input, shape index: {}]   ;;  %s1808_s15 = inlined_call_operand.vmem [shape: f32[1,133], index: 15, kind: input, shape index: {}]   ;;  %s1809_s16 = inlined_call_operand.hbm [shape: bf16[133,128], index: 16, kind: input, shape index: {}]   ;;  %s1810_s17 = inlined_call_operand.vmem [shape: f32[1,128], index: 17, kind: input, shape index: {}]   ;;  %s1811_s18 = inlined_call_operand.vmem [shape: f32[1,128], index: 18, kind: input, shape index: {}]   ;;  %s1812_s19 = inlined_call_operand.vmem [shape: f32[1,128], index: 19, kind: input, shape index: {}]   ;;  %s1813_s20 = inlined_call_operand.hbm [shape: f32[2,128], index: 20, kind: output, shape index: {}]  }
   0x1   :  { %1816 = sst [smem:[#allocation24_spill]] %s1793_s0 }
   0x2   :  { %1817 = sst [smem:[#allocation25_spill]] %s1794_s1 }
   0x3   :  { %1818 = sst [smem:[#allocation26_spill]] %s1795_s2 }
   0x4   :  { %1819 = sst [smem:[#allocation27_spill]] %s1796_s3 }
   0x5   :  { %1820 = sst [smem:[#allocation28_spill]] %s1797_s4 }
   0x6   :  { %1821 = sst [smem:[#allocation29_spill]] %s1813_s20 }
   0x7   :  { %25 = vsyncpa [#allocation3], 0 }
   0x8   :  { %26 = vsyncpa [#allocation6], 0 }
   0x9   :  { %27 = vsyncpa [#allocation9], 0 }
   0xa   :  { %28 = vsyncpa [#allocation12], 0 }
   0xb   :  { %29 = vsyncpa [#allocation15], 0  ;;  %s1822_s23 = sld [smem:[#allocation26_spill]] }
  0x11   :  { %s49_s24 = sshll.u32 %s1822_s23, 4  ;;  %s50_s24 = int_to_ptr.hbm [resolvable:$true] %s49_s24 }
  0x12   :  { %30 = vsyncpa [#allocation4], 0  ;;  %s1517_s2 = smov [#allocation5]   ;;  %s75_s27 = sshll.u32 %s1798_s5, 4  ;;  %s76_s27 = int_to_ptr.hbm [resolvable:$true] %s75_s27 }
  0x13   :  { %s51_s25 = sshll.u32 %s1517_s2, 4  ;;  %s1518_s28 = smov [#allocation8]   ;;  %s52_s25 = int_to_ptr.vmem [resolvable:$true] %s51_s25 }
  0x14   :  { %54 = dma.hbm_to_vmem [thread:$0]  %s50_s24, 16, %s52_s25, [#allocation6]  }
  0x15   :  { %s77_s4 = sshll.u32 %s1518_s28, 4  ;;  %s104_s0 = sshll.u32 %s1803_s10, 4  ;;  %s78_s4 = int_to_ptr.vmem [resolvable:$true] %s77_s4  ;;  %s105_s0 = int_to_ptr.hbm [resolvable:$true] %s104_s0 }
  0x16   :  { %80 = dma.hbm_to_vmem [thread:$0]  %s76_s27, 16, %s78_s4, [#allocation9]  }
  0x17   :  { %s1519_s21 = smov [#allocation11]   ;;  %s1814_s22 = smov 64  }
  0x18   :  { %s106_s1 = sshll.u32 %s1519_s21, 4  ;;  %s1521_s23 = smov 4   ;;  %s107_s1 = int_to_ptr.vmem [resolvable:$true] %s106_s1 }
  0x19   :  { %112 = dma.hbm_to_vmem [thread:$0]  %s105_s0, 1088, %s107_s1, [#allocation12], %s1814_s22, %s1814_s22, %s1521_s23  }
  0x1a   :  { %s128_s2 = sshll.u32 %s1805_s12, 4  ;;  %s1522_s25 = smov [#allocation14]   ;;  %s129_s2 = int_to_ptr.hbm [resolvable:$true] %s128_s2 }
  0x1b   :  { %s130_s3 = sshll.u32 %s1522_s25, 4  ;;  %s1823_s10 = sld [smem:[#allocation24_spill]]  ;;  %s131_s3 = int_to_ptr.vmem [resolvable:$true] %s130_s3 }
  0x1c   :  { %s1523_s4 = smov 128   ;;  %s1524_s29 = smov 8  }
  0x1d   :  { %136 = dma.hbm_to_vmem [thread:$0]  %s129_s2, 512, %s131_s3, [#allocation15], %s1523_s4, %s1523_s4, %s1524_s29  }
  0x1e   :  { %s1824_s20 = sld [smem:[#allocation28_spill]]  ;;  %s1525_s1 = smov [#allocation2]  }
  0x1f   :  { %s38_s22 = sshll.u32 %s1525_s1, 4  ;;  %s1526_s12 = smov [#allocation7]   ;;  %s39_s22 = int_to_ptr.vmem [resolvable:$true] %s38_s22 }
  0x20   :  { %s63_s5 = sshll.u32 %s1526_s12, 4  ;;  %s85_s26 = sshll.u32 %s1799_s6, 4  ;;  %s64_s5 = int_to_ptr.vmem [resolvable:$true] %s63_s5  ;;  %s86_s26 = int_to_ptr.hbm [resolvable:$true] %s85_s26 }
  0x21   :  { %s36_s28 = sshll.u32 %s1823_s10, 4  ;;  %s1825_s27 = smov 64   ;;  %s37_s28 = int_to_ptr.hbm [resolvable:$true] %s36_s28 }
  0x22   :  { %41 = dma.hbm_to_vmem [thread:$0]  %s37_s28, 256, %s39_s22, [#allocation3]  }
  0x23   :  { %s1527_s10 = smov [#allocation10]   ;;  %s1528_s22 = smov [#allocation13]  }
  0x24   :  { %s61_s0 = sshll.u32 %s1824_s20, 4  ;;  %s118_s20 = sshll.u32 %s1804_s11, 4  ;;  %s62_s0 = int_to_ptr.hbm [resolvable:$true] %s61_s0  ;;  %s119_s20 = int_to_ptr.hbm [resolvable:$true] %s118_s20 }
  0x25   :  { %69 = dma.hbm_to_vmem [thread:$0]  %s62_s0, 1088, %s64_s5, [#allocation6], %s1825_s27, %s1825_s27, %s1521_s23  }
  0x26   :  { %s87_s30 = sshll.u32 %s1527_s10, 4  ;;  %s120_s28 = sshll.u32 %s1528_s22, 4  ;;  %s88_s30 = int_to_ptr.vmem [resolvable:$true] %s87_s30  ;;  %s121_s28 = int_to_ptr.vmem [resolvable:$true] %s120_s28 }
  0x27   :  { %93 = dma.hbm_to_vmem [thread:$0]  %s86_s26, 512, %s88_s30, [#allocation9], %s1523_s4, %s1523_s4, %s1524_s29  }
  0x28   :  { %s147_s6 = sshll.u32 %s1809_s16, 4  ;;  %s1529_s12 = smov [#allocation16]   ;;  %s148_s6 = int_to_ptr.hbm [resolvable:$true] %s147_s6 }
  0x29   :  { %123 = dma.hbm_to_vmem [thread:$0]  %s119_s20, 16, %s121_s28, [#allocation12]  }
  0x2a   :  { %s149_s0 = sshll.u32 %s1529_s12, 4  ;;  %s150_s0 = int_to_ptr.vmem [resolvable:$true] %s149_s0 }
  0x2b   :  { %155 = dma.hbm_to_vmem [thread:$0]  %s148_s6, 1088, %s150_s0, [#allocation15], %s1825_s27, %s1825_s27, %s1521_s23  }
  0x2c   :  { %1505 = dma.done.wait [#allocation3], 256  }
  0x2d   :  { %1506 = vsyncadd [#allocation3], 4294967040 }
  0x2e   :  { %1507 = dma.done.wait [#allocation6], 1104  }
  0x2f   :  { %1508 = vsyncadd [#allocation6], 4294966192 }
  0x30   :  { %1509 = dma.done.wait [#allocation9], 528  }
  0x31   :  { %1510 = vsyncadd [#allocation9], 4294966768 }
  0x32   :  { %1511 = dma.done.wait [#allocation12], 1104  }
  0x33   :  { %1512 = vsyncadd [#allocation12], 4294966192 }
  0x34   :  { %1513 = dma.done.wait [#allocation15], 1600  }
  0x35   :  { %1514 = vsyncadd [#allocation15], 4294965696  ;;  %v202_v0 = vlaneseq  ;;  %v1243_v2 = vld [vmem:[#allocation5] ss:$0 sm:$0xff]  ;;  %vm209_vm0 = vcmask 15360   ;;  %v1196_v4 = vld [vmem:[#allocation7 + $0x30] sm:$0xff] }
  0x36   :  { %v1197_v3 = vld [vmem:[#allocation7 + $0x38] sm:$0xff]  ;;  %v1530_v5 = vmov 0.0   ;;  %v1195_v8 = vld [vmem:[#allocation7 + $0x28] sm:$0xff]  ;;  %v1194_v9 = vld [vmem:[#allocation7 + $0x20] sm:$0xff]  ;;  %vm358_vm2 = vcmask 1041408   ;;  %vm359_vm3 = vcmask 1042432  }
  0x37   :  { %v203_v1 = vshrl.u32 %v202_v0, 7  ;;  %365 = vmatpush.bf16.msra.mxu2 %v1197_v3  ;;  %v1193_v10 = vld [vmem:[#allocation7 + $0x18] sm:$0xff]  ;;  %v1192_v11 = vld [vmem:[#allocation7 + $0x10] sm:$0xff]  ;;  %v1191_v12 = vld [vmem:[#allocation7 + $0x8] sm:$0xff]  ;;  %v1531_v16 = vmov 65535   ;;  %s1826_s23 = sld [smem:[#allocation27_spill]] }
  0x38   :  { %v1190_v13 = vld [vmem:[#allocation7] sm:$0xff]  ;;  %v360_v17 = vsel %vm358_vm2, 4294967295, %v1531_v16  ;;  %v200_v24 = vld [vmem:[#allocation2 + $0x8] sm:$0xff]  ;;  %v199_v25 = vld [vmem:[#allocation2] sm:$0xff]  ;;  %vm229_vm5 = vcmask 39936   ;;  %v1532_v30 = vmov 1.0  }
  0x39   :  { %vm206_vm1 = vcmp.eq.s32.totalorder %v203_v1, %v1243_v2  ;;  %v290_v14 = vld [vmem:[#allocation7 + $0x40] sm:$0x7]  ;;  %v1681_v18 = vsel %vm359_vm3, %v360_v17, 0  ;;  %v1244_v35 = vld [vmem:[#allocation8] ss:$0 sm:$0xff]  ;;  %s1533_s4 = smov 96  }
  0x3a   :  { %v1041_v6 = vsel %vm206_vm1, 1.0, %v1530_v5  ;;  %v337_v15 = vunpack.c.l.b16 %v290_v14  ;;  %vm435_vm8 = vcmask 1043456   ;;  %vm395_vm9 = vcmask 261120   ;;  %v1093_v58 = vld [vmem:[#allocation10 + $0x10] sm:$0xf]  ;;  %s1827_s3 = sld [smem:[#allocation25_spill]] }
  0x3b   :  { %v210_v7 = vsel %vm209_vm0, %v1041_v6, -inf  ;;  %366 = vmatpush.bf16.msra.mxu2 %v1196_v4  ;;  %vm417_vm10 = vcmask 64512   ;;  %v1201_v59 = vld [vmem:[#allocation10 + $0x14] sm:$0xf0]  ;;  %v1200_v60 = vld [vmem:[#allocation10 + $0x14] sm:$0xf] }
  0x3c   :  { %211 = vmax.xlane.f32.xlu0 %v210_v7  ;;  %v346_v19 = vpack.c.b16 %v337_v15, %v337_v15  ;;  %v1094_v61 = vor.u32 %v1201_v59, %v1093_v58  ;;  %v1095_v62 = vld [vmem:[#allocation10 + $0x18] sm:$0xf0]  ;;  %v1085_v6 = vld [vmem:[#allocation10] sm:$0xf]  ;;  %v1199_v7 = vld [vmem:[#allocation10 + $0x4] sm:$0xf0] }
  0x3d   :  { %v201_v21 = vld [vmem:[%s1826_s23] sm:$0x3]  ;;  %v1098_v63 = vor.u32 %v1200_v60, %v1095_v62  ;;  %s1536_s1 = smov [#allocation17]   ;;  %s1828_s11 = sld [smem:[#allocation29_spill]] }
  0x3e   :  { %v363_v20 = vand.u32 %v1681_v18, %v346_v19  ;;  %v218_v22 = vperm.slane %v201_v21, 1  ;;  %v217_v23 = vperm.slane %v201_v21, 0  ;;  %487 = vmatpush.bf16.msra.mxu3 %v1094_v61  ;;  %v296_v15 = vld [vmem:[%s1800_s7] sm:$0x3]  ;;  %s1025_s6 = sshll.u32 %s1536_s1, 4  ;;  %s1026_s6 = int_to_ptr.vmem [resolvable:$true] %s1025_s6 }
  0x3f   :  { %367 = vmatpush.bf16.msra.mxu2 %v1195_v8  ;;  %v1198_v8 = vld [vmem:[#allocation10 + $0x4] sm:$0xf]  ;;  %v455_v16 = vperm.slane %v296_v15, 1 }
  0x43   :  { %368 = vmatpush.bf16.msra.mxu2 %v1194_v9  ;;  %v1086_v9 = vor.u32 %v1199_v7, %v1085_v6  ;;  %s1027_s16 = sshll.u32 %s1828_s11, 4  ;;  %s1028_s16 = int_to_ptr.hbm [resolvable:$true] %s1027_s16 }
  0x45   :  { %488 = vmatpush.bf16.msra.mxu3 %v1086_v9 }
  0x47   :  { %369 = vmatpush.bf16.msra.mxu2 %v1193_v10  ;;  %v1087_v10 = vld [vmem:[#allocation10 + $0x8] sm:$0xf0] }
  0x4b   :  { %370 = vmatpush.bf16.msra.mxu2 %v1192_v11  ;;  %v1090_v11 = vor.u32 %v1198_v8, %v1087_v10 }
  0x4f   :  { %371 = vmatpush.bf16.msra.mxu2 %v1191_v12 }
  0x53   :  { %372 = vmatpush.bf16.msra.mxu2 %v1190_v13 }
  0x57   :  { %385 = vmatpush.bf16.msrb.mxu2 %v363_v20  ;;  %v454_v20 = vperm.slane %v296_v15, 0 }
  0xaf   :  { %v212_v26 = vpop.xlane.xlu0 %211 }
  0xb0   :  { %vm213_vm4 = vcmp.gt.f32.partialorder %v212_v26, 0.0 }
  0xb1   :  { %v1687_v27 = vsel %vm213_vm4, %v218_v22, %v200_v24  ;;  %v1689_v28 = vsel %vm213_vm4, %v217_v23, %v199_v25 }
  0xb2   :  { %vm223_vm6 = vcmp.ne.f32.partialorder %v1689_v28, 0.0  ;;  %vm224_vm7 = vcmp.ne.f32.partialorder %v1687_v27, 0.0  ;;  %v299_v29 = vpack.c.bf16 %v1689_v28, %v1689_v28  ;;  %v300_v32 = vpack.c.bf16 %v1687_v27, %v1687_v27 }
  0xb3   :  { %1044 = vmatpush.xpose.msk.msra.mxu0 %vm223_vm6, %v1532_v30  ;;  %v1043_v31 = vsel %vm224_vm7, 1.0, %v1530_v5 }
  0xb4   :  { %1046 = vmatpush.xpose.msk.msra.mxu1 %vm229_vm5, %v1043_v31  ;;  %373 = vmatmul.bf16.vlgmr.msra.gmra.mxu2 %v299_v29 }
  0xb6   :  { %1045 = vmatmul.msk.f32.vlgmr.msra.gmra.mxu0 %vm223_vm6, %v1532_v30 }
  0xb7   :  { %1047 = vmatmul.msk.f32.vlgmr.msra.gmra.mxu1 %vm229_vm5, %v1043_v31  ;;  %v1534_v31 = vmov 133.0  }
  0xc4   :  { %1080 = vmatmul.msk.bf16.vlgmr.msrb.gmra.mxu2 %vm229_vm5, %v300_v32  ;;  %v1209_v32 = vld [vmem:[#allocation11 + $0x38] sm:$0xff] }
 0x133   :  { %v250_v45 = vpop.f32.mrf.mxu0 }
 0x134   :  { %v270_v46 = vpop.f32.mrf.mxu1 }
 0x135   :  { %v1706_v47 = vadd.f32 %v270_v46, %v250_v45  ;;  %v1208_v45 = vld [vmem:[#allocation11 + $0x30] sm:$0xff]  ;;  %v1207_v46 = vld [vmem:[#allocation11 + $0x28] sm:$0xff] }
 0x137   :  { %v374_v33 = vpop.f32.mrf.mxu2  ;;  %vm273_vm11 = vcmp.eq.f32.partialorder %v1706_v47, 0.0 }
 0x138   :  { %v375_v36 = vadd.f32 %v1244_v35, %v374_v33 }
 0x13f   :  { %v376_v34 = vpop.f32.mrf.mxu2 }
 0x147   :  { %v387_v37 = vpop.f32.mrf.mxu2 }
 0x148   :  { %v388_v38 = vadd.f32 %v387_v37, %v375_v36 }
 0x14a   :  { %v391_v39 = vpack.c.bf16 %v388_v38, %v388_v38 }
 0x14c   :  { %430 = vrot.lane.b32.xlu2 %v391_v39, %s1825_s27  ;;  %393 = vrot.lane.b32.xlu0 %v391_v39, %s1533_s4 }
 0x14f   :  { %v389_v40 = vpop.f32.mrf.mxu2 }
 0x1a6   :  { %v431_v41 = vpop.permute.xlu2 %430 }
 0x1a7   :  { %v437_v42 = vsel %vm435_vm8, %v431_v41, 0 }
 0x1a8   :  { %446 = vmatpush.bf16.msrb.mxu1 %v437_v42 }
 0x1ac   :  { %644 = vmatpush.bf16.msra.mxu1 %v1209_v32 }
 0x1b0   :  { %645 = vmatpush.bf16.msra.mxu1 %v1208_v45  ;;  %v1212_v45 = vld [vmem:[#allocation14 + $0x14] sm:$0xf] }
 0x1b4   :  { %646 = vmatpush.bf16.msra.mxu1 %v1207_v46 }
 0x1be   :  { %v394_v43 = vpop.permute.xlu0 %393 }
 0x1bf   :  { %v400_v44 = vsel %vm395_vm9, %v394_v43, 0 }
 0x1c0   :  { %409 = vmatpush.bf16.xpose.msrb.mxu0 %v400_v44 }
 0x1c7   :  { %1081 = vmatmul.msk.bf16.vlgmr.msrb.gmra.mxu0 %vm395_vm9, %v391_v39 }
 0x1c8   :  { %500 = vmatpush.bf16.msra.mxu0 %v1098_v63 }
 0x1cc   :  { %501 = vmatpush.bf16.msra.mxu0 %v1090_v11 }
 0x244   :  { %v411_v48 = vpop.f32.mrf.mxu0 }
 0x245   :  { %v415_v49 = vmul.f32 0.17677669, %v411_v48  ;;  %v1206_v48 = vld [vmem:[#allocation11 + $0x20] sm:$0xff] }
 0x246   :  { %647 = vmatpush.bf16.msra.mxu1 %v1206_v48  ;;  %v1148_v48 = vld [vmem:[#allocation14 + $0x18] sm:$0xf0] }
 0x247   :  { %v416_v50 = vsel %vm273_vm11, -1e+09, %v415_v49  ;;  %v1205_v49 = vld [vmem:[#allocation11 + $0x18] sm:$0xff] }
 0x248   :  { %v418_v51 = vsel %vm417_vm10, %v416_v50, -inf }
 0x249   :  { %419 = vmax.xlane.f32.xlu1 %v418_v51  ;;  %v573_v51 = vld [vmem:[#allocation11 + $0x40] sm:$0x7] }
 0x24a   :  { %648 = vmatpush.bf16.msra.mxu1 %v1205_v49  ;;  %v1151_v49 = vor.u32 %v1212_v45, %v1148_v48 }
 0x24c   :  { %v413_v52 = vpop.f32.mrf.mxu0 }
 0x24d   :  { %v1203_v52 = vld [vmem:[#allocation11 + $0x8] sm:$0xff] }
 0x2bc   :  { %v420_v53 = vpop.xlane.xlu1 %419 }
 0x2bd   :  { %v421_v54 = vsub.f32 %v416_v50, %v420_v53  ;;  %v1204_v50 = vld [vmem:[#allocation11 + $0x10] sm:$0xff]  ;;  %v620_v53 = vunpack.c.l.b16 %v573_v51 }
 0x2be   :  { %649 = vmatpush.bf16.msra.mxu1 %v1204_v50 }
 0x2bf   :  { %v422_v55 = vmul.f32 1.442695, %v421_v54  ;;  %v1202_v54 = vld [vmem:[#allocation11] sm:$0xff] }
 0x2c1   :  { %1249 = vpow2.f32 %v422_v55  ;;  %v629_v55 = vpack.c.b16 %v620_v53, %v620_v53  ;;  %v1138_v53 = vld [vmem:[#allocation14] sm:$0xf] }
 0x2c2   :  { %650 = vmatpush.bf16.msra.mxu1 %v1203_v52 }
 0x2c6   :  { %651 = vmatpush.bf16.msra.mxu1 %v1202_v54  ;;  %v1211_v54 = vld [vmem:[#allocation14 + $0x4] sm:$0xf0] }
 0x2c7   :  { %v1250_v56 = vpop.eup %1249 }
 0x2c8   :  { %v424_v57 = vsel %vm417_vm10, %v1250_v56, 0.0 }
 0x2c9   :  { %425 = vadd.xlane.f32.xlu1 %v424_v57 }
 0x33c   :  { %v426_v1 = vpop.xlane.xlu1 %425 }
 0x33d   :  { %1251 = vrcp.f32 %v426_v1 }
 0x33e   :  { %1253 = vrcp.f32 %v1534_v31 }
 0x343   :  { %v1252_v2 = vpop.eup %1251 }
 0x344   :  { %v428_v3 = vmul.f32 %v1252_v2, %v1250_v56  ;;  %v1254_v33 = vpop.eup %1253  ;;  %v642_v56 = vand.u32 %v629_v55, %v1681_v18  ;;  %v297_v2 = vld [vmem:[%s1801_s8] sm:$0x3]  ;;  %v1210_v55 = vld [vmem:[#allocation14 + $0x4] sm:$0xf] }
 0x345   :  { %v514_v34 = vmul.f32 133.0, %v1254_v33  ;;  %vm518_vm12 = vweird.f32 %v1254_v33  ;;  %v544_v6 = vperm.slane %v297_v2, 0  ;;  %v545_v7 = vperm.slane %v297_v2, 1 }
 0x346   :  { %v429_v4 = vpack.c.bf16 %v428_v3, %v428_v3  ;;  %664 = vmatpush.bf16.msrb.mxu3 %v642_v56  ;;  %v1139_v56 = vor.u32 %v1211_v54, %v1138_v53 }
 0x347   :  { %v515_v35 = vsub.f32 1.0, %v514_v34 }
 0x348   :  { %1082 = vmatmul.msk.bf16.vlgmr.msrb.gmra.mxu1 %vm417_vm10, %v429_v4  ;;  %v298_v4 = vld [vmem:[%s1802_s9] sm:$0x3] }
 0x349   :  { %v516_v36 = vmul.f32 %v1254_v33, %v515_v35  ;;  %v551_v11 = vperm.slane %v298_v4, 0 }
 0x34b   :  { %v517_v37 = vadd.f32 %v1254_v33, %v516_v36 }
 0x3c5   :  { %v448_v12 = vpop.f32.mrf.mxu1 }
 0x3c6   :  { %v452_v13 = vpack.c.bf16 %v448_v12, %v448_v12  ;;  %v552_v12 = vperm.slane %v298_v4, 1 }
 0x3c8   :  { %1099 = vmatmul.msk.bf16.vlgmr.msra.gmra.mxu3 %vm395_vm9, %v452_v13  ;;  %1100 = vmatmul.msk.bf16.vlgmr.msra.gmra.mxu0 %vm395_vm9, %v452_v13 }
 0x3cd   :  { %v450_v14 = vpop.f32.mrf.mxu1 }
 0x445   :  { %v503_v17 = vpop.f32.mrf.mxu0 }
 0x446   :  { %v504_v19 = vadd.f32 %v503_v17, %v455_v16 }
 0x448   :  { %v508_v21 = vadd.f32 %v504_v19, %v1687_v27  ;;  %v1722_v27 = vsel %vm518_vm12, %v1254_v33, %v517_v37 }
 0x44a   :  { %v509_v26 = vsel %vm229_vm5, %v508_v21, 0.0 }
 0x44b   :  { %v490_v22 = vpop.f32.mrf.mxu3 }
 0x44c   :  { %v491_v23 = vadd.f32 %v490_v22, %v454_v20 }
 0x44d   :  { %v505_v24 = vpop.f32.mrf.mxu0 }
 0x44e   :  { %v507_v25 = vadd.f32 %v491_v23, %v1689_v28 }
 0x450   :  { %v510_v29 = vadd.f32 %v509_v26, %v507_v25 }
 0x452   :  { %511 = vadd.xlane.f32.xlu2 %v510_v29 }
 0x453   :  { %v492_v30 = vpop.f32.mrf.mxu3 }
 0x4c5   :  { %v512_v38 = vpop.xlane.xlu2 %511 }
 0x4c6   :  { %v520_v28 = vmul.f32 %v1722_v27, %v512_v38 }
 0x4c8   :  { %v521_v39 = vsub.f32 %v507_v25, %v520_v28  ;;  %v522_v40 = vsub.f32 %v508_v21, %v520_v28  ;;  %v1245_v21 = vld [vmem:[#allocation13] ss:$0 sm:$0xff] }
 0x4ca   :  { %v523_v41 = vmul.f32 %v521_v39, %v521_v39  ;;  %v524_v42 = vmul.f32 %v522_v40, %v522_v40 }
 0x4cc   :  { %v525_v43 = vsel %vm229_vm5, %v524_v42, 0.0 }
 0x4cd   :  { %v526_v44 = vadd.f32 %v525_v43, %v523_v41  ;;  %v1146_v43 = vld [vmem:[#allocation14 + $0x10] sm:$0xf] }
 0x4cf   :  { %527 = vadd.xlane.f32.xlu1 %v526_v44  ;;  %v1213_v44 = vld [vmem:[#allocation14 + $0x14] sm:$0xf0] }
 0x4d0   :  { %v1147_v46 = vor.u32 %v1213_v44, %v1146_v43  ;;  %v581_v43 = vld [vmem:[%s1808_s15] sm:$0x3]  ;;  %v1215_v44 = vld [vmem:[#allocation16 + $0x8] sm:$0xff] }
 0x4d1   :  { %v821_v53 = vperm.slane %v581_v43, 1 }
 0x4d2   :  { %763 = vmatpush.bf16.msra.mxu3 %v1147_v46 }
 0x4d6   :  { %764 = vmatpush.bf16.msra.mxu3 %v1139_v56 }
 0x542   :  { %v528_v57 = vpop.xlane.xlu1 %527 }
 0x543   :  { %v529_v58 = vmul.f32 %v528_v57, %v1722_v27  ;;  %v1140_v57 = vld [vmem:[#allocation14 + $0x8] sm:$0xf0] }
 0x545   :  { %v530_v59 = vadd.f32 1e-06, %v529_v58  ;;  %v1143_v58 = vor.u32 %v1210_v55, %v1140_v57 }
 0x547   :  { %1255 = vrsqrt.f32 %v530_v59  ;;  %vm537_vm14 = vweird.f32 %v530_v59 }
 0x54d   :  { %v1256_v60 = vpop.eup %1255 }
 0x54e   :  { %v532_v61 = vmul.f32 %v1256_v60, %v530_v59  ;;  %vm538_vm13 = vweird.f32 %v1256_v60 }
 0x54f   :  { %vm539_vm15 = vmor %vm537_vm14, %vm538_vm13 }
 0x550   :  { %v533_v62 = vmul.f32 %v1256_v60, %v532_v61 }
 0x552   :  { %v534_v63 = vmul.f32 0.5, %v533_v62  ;;  %v579_v62 = vld [vmem:[%s1806_s13] sm:$0x3] }
 0x554   :  { %v535_v1 = vsub.f32 1.5, %v534_v63  ;;  %v731_v63 = vperm.slane %v579_v62, 1 }
 0x556   :  { %v536_v3 = vmul.f32 %v1256_v60, %v535_v1 }
 0x558   :  { %v540_v8 = vsel %vm539_vm15, %v1256_v60, %v536_v3  ;;  %v730_v3 = vperm.slane %v579_v62, 0 }
 0x559   :  { %v541_v9 = vmul.f32 %v540_v8, %v521_v39  ;;  %v542_v10 = vmul.f32 %v540_v8, %v522_v40 }
 0x55b   :  { %v548_v13 = vmul.f32 %v544_v6, %v541_v9  ;;  %v549_v14 = vmul.f32 %v545_v7, %v542_v10 }
 0x55d   :  { %v1734_v15 = vadd.f32 %v551_v11, %v548_v13  ;;  %v1736_v16 = vadd.f32 %v552_v12, %v549_v14  ;;  %v828_v13 = vld [vmem:[%s1827_s3] sm:$0x3]  ;;  %v1535_v14 = vmov 0  }
 0x55e   :  { %1242 = vset.pattern.permute.xlu0 %v1535_v14 }
 0x55f   :  { %v582_v17 = vpack.c.bf16 %v1734_v15, %v1734_v15  ;;  %v583_v19 = vpack.c.bf16 %v1736_v16, %v1736_v16 }
 0x561   :  { %652 = vmatmul.bf16.vlgmr.msra.gmra.mxu1 %v582_v17  ;;  %1133 = vmatmul.msk.bf16.vlgmr.msrb.gmra.mxu3 %vm229_vm5, %v583_v19 }
 0x5de   :  { %v653_v20 = vpop.f32.mrf.mxu1 }
 0x5df   :  { %v654_v22 = vadd.f32 %v1245_v21, %v653_v20 }
 0x5e4   :  { %v666_v23 = vpop.f32.mrf.mxu3 }
 0x5e5   :  { %v667_v24 = vadd.f32 %v666_v23, %v654_v22 }
 0x5e6   :  { %v655_v25 = vpop.f32.mrf.mxu1 }
 0x5e7   :  { %v670_v26 = vpack.c.bf16 %v667_v24, %v667_v24  ;;  %v1221_v24 = vld [vmem:[#allocation16 + $0x38] sm:$0xff] }
 0x5e8   :  { %958 = vmatpush.bf16.msrb.mxu3 %v1221_v24 }
 0x5e9   :  { %707 = vrot.lane.b32.xlu2 %v670_v26, %s1825_s27  ;;  %672 = vrot.lane.b32.xlu1 %v670_v26, %s1533_s4 }
 0x5ec   :  { %v668_v29 = vpop.f32.mrf.mxu3 }
 0x643   :  { %v708_v30 = vpop.permute.xlu2 %707 }
 0x644   :  { %v713_v31 = vsel %vm435_vm8, %v708_v30, 0 }
 0x645   :  { %722 = vmatpush.bf16.msra.mxu2 %v713_v31  ;;  %v1219_v31 = vld [vmem:[#allocation16 + $0x28] sm:$0xff] }
 0x65b   :  { %v673_v32 = vpop.permute.xlu1 %672 }
 0x65c   :  { %v678_v33 = vsel %vm395_vm9, %v673_v32, 0  ;;  %v1218_v32 = vld [vmem:[#allocation16 + $0x20] sm:$0xff] }
 0x65d   :  { %687 = vmatpush.bf16.xpose.msrb.mxu0 %v678_v33 }
 0x664   :  { %1134 = vmatmul.msk.bf16.vlgmr.msrb.gmra.mxu0 %vm395_vm9, %v670_v26  ;;  %v1220_v26 = vld [vmem:[#allocation16 + $0x30] sm:$0xff] }
 0x665   :  { %776 = vmatpush.bf16.msra.mxu0 %v1151_v49  ;;  %959 = vmatpush.bf16.msrb.mxu3 %v1220_v26 }
 0x669   :  { %777 = vmatpush.bf16.msra.mxu0 %v1143_v58  ;;  %960 = vmatpush.bf16.msrb.mxu3 %v1219_v31 }
 0x66d   :  { %961 = vmatpush.bf16.msrb.mxu3 %v1218_v32 }
 0x6e1   :  { %v689_v34 = vpop.f32.mrf.mxu0 }
 0x6e2   :  { %v693_v35 = vmul.f32 0.17677669, %v689_v34 }
 0x6e4   :  { %v694_v36 = vsel %vm273_vm11, -1e+09, %v693_v35  ;;  %v1217_v35 = vld [vmem:[#allocation16 + $0x18] sm:$0xff] }
 0x6e5   :  { %v695_v37 = vsel %vm417_vm10, %v694_v36, -inf  ;;  %962 = vmatpush.bf16.msrb.mxu3 %v1217_v35 }
 0x6e6   :  { %696 = vmax.xlane.f32.xlu0 %v695_v37  ;;  %v896_v37 = vld [vmem:[#allocation16 + $0x40] sm:$0x7] }
 0x6e9   :  { %v691_v38 = vpop.f32.mrf.mxu0 }
 0x759   :  { %v697_v28 = vpop.xlane.xlu0 %696 }
 0x75a   :  { %v698_v39 = vsub.f32 %v694_v36, %v697_v28  ;;  %v1216_v28 = vld [vmem:[#allocation16 + $0x10] sm:$0xff] }
 0x75b   :  { %963 = vmatpush.bf16.msrb.mxu3 %v1216_v28 }
 0x75c   :  { %v699_v40 = vmul.f32 1.442695, %v698_v39  ;;  %v934_v39 = vunpack.c.l.b16 %v896_v37 }
 0x75e   :  { %1257 = vpow2.f32 %v699_v40  ;;  %v943_v49 = vpack.c.b16 %v934_v39, %v934_v39 }
 0x75f   :  { %964 = vmatpush.bf16.msrb.mxu3 %v1215_v44 }
 0x760   :  { %v956_v55 = vand.u32 %v943_v49, %v1681_v18 }
 0x764   :  { %v1258_v41 = vpop.eup %1257 }
 0x765   :  { %v701_v42 = vsel %vm417_vm10, %v1258_v41, 0.0 }
 0x766   :  { %702 = vadd.xlane.f32.xlu1 %v701_v42  ;;  %v827_v42 = vand.u32 127, %v202_v0 }
 0x768   :  { %vm984_vm6 = vcmp.lt.s32.totalorder %v827_v42, 32 }
 0x7d9   :  { %v703_v47 = vpop.xlane.xlu1 %702 }
 0x7da   :  { %1259 = vrcp.f32 %v703_v47 }
 0x7e0   :  { %v1260_v50 = vpop.eup %1259 }
 0x7e1   :  { %v705_v51 = vmul.f32 %v1260_v50, %v1258_v41 }
 0x7e3   :  { %v706_v52 = vpack.c.bf16 %v705_v51, %v705_v51 }
 0x7e5   :  { %1135 = vmatmul.msk.bf16.vlgmr.msra.gmra.mxu2 %vm417_vm10, %v706_v52  ;;  %v820_v52 = vperm.slane %v581_v43, 0 }
 0x868   :  { %v724_v59 = vpop.f32.mrf.mxu2 }
 0x869   :  { %v728_v60 = vpack.c.bf16 %v724_v59, %v724_v59  ;;  %v1214_v59 = vld [vmem:[#allocation16] sm:$0xff] }
 0x86a   :  { %965 = vmatpush.bf16.msrb.mxu3 %v1214_v59 }
 0x86b   :  { %1152 = vmatmul.msk.bf16.vlgmr.msra.gmra.mxu3 %vm395_vm9, %v728_v60  ;;  %1153 = vmatmul.msk.bf16.vlgmr.msra.gmra.mxu0 %vm395_vm9, %v728_v60 }
 0x870   :  { %v726_v61 = vpop.f32.mrf.mxu2 }
 0x8e8   :  { %v779_v1 = vpop.f32.mrf.mxu0 }
 0x8e9   :  { %v780_v2 = vadd.f32 %v779_v1, %v731_v63 }
 0x8eb   :  { %v784_v4 = vadd.f32 %v780_v2, %v1736_v16 }
 0x8ed   :  { %v785_v10 = vsel %vm229_vm5, %v784_v4, 0.0 }
 0x8ee   :  { %v766_v6 = vpop.f32.mrf.mxu3 }
 0x8ef   :  { %v767_v7 = vadd.f32 %v766_v6, %v730_v3 }
 0x8f0   :  { %v781_v8 = vpop.f32.mrf.mxu0 }
 0x8f1   :  { %v783_v9 = vadd.f32 %v767_v7, %v1734_v15 }
 0x8f3   :  { %v786_v11 = vadd.f32 %v785_v10, %v783_v9 }
 0x8f5   :  { %787 = vadd.xlane.f32.xlu0 %v786_v11 }
 0x8f6   :  { %v768_v12 = vpop.f32.mrf.mxu3 }
 0x909   :  { %830 = vperm.xlu0 %1242, %v828_v13  }
 0x968   :  { %v788_v17 = vpop.xlane.xlu0 %787 }
 0x969   :  { %v789_v16 = vmul.f32 %v788_v17, %v1722_v27 }
 0x96b   :  { %v790_v19 = vsub.f32 %v783_v9, %v789_v16  ;;  %v791_v20 = vsub.f32 %v784_v4, %v789_v16 }
 0x96d   :  { %v792_v21 = vmul.f32 %v790_v19, %v790_v19  ;;  %v793_v22 = vmul.f32 %v791_v20, %v791_v20 }
 0x96f   :  { %v794_v15 = vsel %vm229_vm5, %v793_v22, 0.0 }
 0x970   :  { %v795_v23 = vadd.f32 %v794_v15, %v792_v21 }
 0x972   :  { %796 = vadd.xlane.f32.xlu2 %v795_v23 }
 0x97b   :  { %v831_v45 = vpop.permute.xlu0 %830 }
 0x97c   :  { %vm832_vm4 = vcmp.eq.s32.totalorder %v827_v42, %v831_v45 }
 0x97d   :  { %v1154_v56 = vsel %vm832_vm4, 1.0, %v1530_v5  ;;  %v1246_v5 = vld [vmem:[%s1810_s17] ss:$0 sm:$0xff] }
 0x9e5   :  { %v797_v25 = vpop.xlane.xlu2 %796 }
 0x9e6   :  { %v798_v29 = vmul.f32 %v797_v25, %v1722_v27  ;;  %v580_v27 = vld [vmem:[%s1807_s14] sm:$0x3] }
 0x9e7   :  { %v813_v46 = vperm.slane %v580_v27, 0  ;;  %v814_v48 = vperm.slane %v580_v27, 1  ;;  %v1247_v25 = vld [vmem:[%s1811_s18] ss:$0 sm:$0xff] }
 0x9e8   :  { %v799_v30 = vadd.f32 1e-06, %v798_v29 }
 0x9ea   :  { %1261 = vrsqrt.f32 %v799_v30  ;;  %vm806_vm1 = vweird.f32 %v799_v30 }
 0x9f0   :  { %v1262_v33 = vpop.eup %1261 }
 0x9f1   :  { %v801_v34 = vmul.f32 %v1262_v33, %v799_v30  ;;  %vm807_vm0 = vweird.f32 %v1262_v33  ;;  %v1248_v30 = vld [vmem:[%s1812_s19] ss:$0 sm:$0xff] }
 0x9f2   :  { %vm808_vm3 = vmor %vm806_vm1, %vm807_vm0 }
 0x9f3   :  { %v802_v36 = vmul.f32 %v1262_v33, %v801_v34 }
 0x9f5   :  { %v803_v38 = vmul.f32 0.5, %v802_v36 }
 0x9f7   :  { %v804_v40 = vsub.f32 1.5, %v803_v38 }
 0x9f9   :  { %v805_v41 = vmul.f32 %v1262_v33, %v804_v40 }
 0x9fb   :  { %v809_v47 = vsel %vm808_vm3, %v1262_v33, %v805_v41 }
 0x9fc   :  { %v810_v50 = vmul.f32 %v809_v47, %v790_v19  ;;  %v811_v51 = vmul.f32 %v809_v47, %v791_v20 }
 0x9fe   :  { %v817_v54 = vmul.f32 %v813_v46, %v810_v50  ;;  %v818_v0 = vmul.f32 %v814_v48, %v811_v51 }
 0xa00   :  { %v824_v57 = vadd.f32 %v820_v52, %v817_v54  ;;  %v825_v58 = vadd.f32 %v821_v53, %v818_v0 }
 0xa02   :  { %853 = vmatpush.msrb.mxu1 %v824_v57  ;;  %873 = vmatpush.msrb.mxu0 %v825_v58 }
 0xa03   :  { %1155 = vmatmul.msk.f32.vlgmr.msrb.gmra.mxu1 %vm417_vm10, %v1154_v56  ;;  %1156 = vmatmul.msk.f32.vlgmr.msrb.gmra.mxu0 %vm417_vm10, %v1154_v56 }
 0xa04   :  { %978 = vmatpush.bf16.msra.mxu1 %v956_v55 }
 0xa80   :  { %v855_v60 = vpop.f32.mrf.mxu1  ;;  %v875_v61 = vpop.f32.mrf.mxu0 }
 0xa81   :  { %v878_v62 = vpack.c.bf16 %v855_v60, %v855_v60  ;;  %v879_v63 = vpack.c.bf16 %v875_v61, %v875_v61 }
 0xa83   :  { %966 = vmatmul.bf16.vlgmr.msrb.gmra.mxu3 %v878_v62  ;;  %1189 = vmatmul.msk.bf16.vlgmr.msra.gmra.mxu1 %vm229_vm5, %v879_v63 }
 0xb00   :  { %v980_v18 = vpop.f32.mrf.mxu1 }
 0xb06   :  { %v967_v1 = vpop.f32.mrf.mxu3 }
 0xb07   :  { %v968_v2 = vadd.f32 %v1246_v5, %v967_v1 }
 0xb08   :  { %v982_v3 = vpop.f32.mrf.mxu1 }
 0xb09   :  { %v981_v4 = vadd.f32 %v980_v18, %v968_v2 }
 0xb0b   :  { %v985_v6 = vsel %vm984_vm6, %v981_v4, 0.0 }
 0xb0c   :  { %v986_v7 = vsel %vm358_vm2, %v985_v6, 0.0 }
 0xb0d   :  { %987 = vadd.xlane.f32.xlu1 %v986_v7 }
 0xb0e   :  { %v969_v8 = vpop.f32.mrf.mxu3 }
 0xb80   :  { %v988_v9 = vpop.xlane.xlu1 %987 }
 0xb81   :  { %v989_v10 = vmul.f32 0.03125, %v988_v9 }
 0xb83   :  { %v990_v11 = vsub.f32 %v985_v6, %v989_v10 }
 0xb85   :  { %v991_v12 = vsel %vm984_vm6, %v990_v11, 0.0 }
 0xb86   :  { %v992_v13 = vmul.f32 %v991_v12, %v991_v12 }
 0xb88   :  { %v993_v14 = vsel %vm358_vm2, %v992_v13, 0.0 }
 0xb89   :  { %994 = vadd.xlane.f32.xlu1 %v993_v14 }
 0xbfc   :  { %v995_v17 = vpop.xlane.xlu1 %994 }
 0xbfd   :  { %v996_v16 = vmul.f32 0.03125, %v995_v17 }
 0xbff   :  { %v997_v19 = vadd.f32 1e-05, %v996_v16 }
 0xc01   :  { %1263 = vrsqrt.f32 %v997_v19  ;;  %vm1004_vm7 = vweird.f32 %v997_v19 }
 0xc07   :  { %v1264_v20 = vpop.eup %1263 }
 0xc08   :  { %v999_v21 = vmul.f32 %v1264_v20, %v997_v19  ;;  %vm1005_vm5 = vweird.f32 %v1264_v20 }
 0xc09   :  { %vm1006_vm8 = vmor %vm1004_vm7, %vm1005_vm5 }
 0xc0a   :  { %v1000_v22 = vmul.f32 %v1264_v20, %v999_v21 }
 0xc0c   :  { %v1001_v15 = vmul.f32 0.5, %v1000_v22 }
 0xc0e   :  { %v1002_v23 = vsub.f32 1.5, %v1001_v15 }
 0xc10   :  { %v1003_v24 = vmul.f32 %v1264_v20, %v1002_v23 }
 0xc12   :  { %v1007_v26 = vsel %vm1006_vm8, %v1264_v20, %v1003_v24 }
 0xc13   :  { %v1008_v29 = vmul.f32 %v1007_v26, %v991_v12 }
 0xc15   :  { %v1013_v31 = vmul.f32 %v1247_v25, %v1008_v29 }
 0xc17   :  { %v1018_v32 = vadd.f32 %v1248_v30, %v1013_v31 }
 0xc19   :  { %1019 = vst [vmem:[#allocation17] sm:$0x3] %v1018_v32 }
 0xc1a   :  { %1030 = dma.vmem_to_hbm [thread:$0]  %s1026_s6, 32, %s1028_s16, [#allocation4]  }
 0xc1b   :  { %1515 = dma.done.wait [#allocation4], 32  }
 0xc1c   :  { %1516 = vsyncadd [#allocation4], 4294967264 }
 0xc1d   :  { %1035 = vsyncpa [#allocation3], 1 }
 0xc1e   :  { %1036 = vsyncpa [#allocation6], 1 }
 0xc1f   :  { %1037 = vsyncpa [#allocation9], 1 }
 0xc20   :  { %1038 = vsyncpa [#allocation12], 1 }
 0xc21   :  { %1039 = vsyncpa [#allocation15], 1 }
 0xc22   :  { %1040 = vsyncpa [#allocation4], 1 }

</bundles_post_ra>
